<compile_context>
chip_gen: v5e
topology: v5e:2x2
jax: 0.10.0
libtpu: 0.0.40
codegen_flags: <defaults>
</compile_context>

<pallas_src>
import math

import jax
import jax.numpy as jnp
from jax import lax
from jax.experimental import pallas as pl
from jax.experimental.pallas import tpu as pltpu

# ---------------- model hyper-parameters (small, consistent with the module) ---
B = 2            # batch
S = 8            # seq_len == context_length
E = 32           # embedding_dim
H = 4            # num_heads
HS = E // H      # head_size
BS = B * S       # flattened rows (batch folded into matmul M dim)
HBS = H * BS     # head-folded rows (heads folded into matmul M dim)
EPS = float(jnp.finfo(jnp.float32).eps)   # torch.nn.RMSNorm(eps=None) -> finfo eps


def transformer_block_kernel(x_ref, mask_ref, wqkv_ref, wp_ref, bp_ref,
                             g1_ref, g2_ref, w1_ref, b1_ref, w2_ref, b2_ref,
                             o_ref):
    x = x_ref[...]                                        # (BS, E) f32

    # ---- RMSNorm 1 (f32 math) ----
    ms = jnp.mean(x * x, axis=-1, keepdims=True)
    xn = x * lax.rsqrt(ms + EPS) * g1_ref[...]
    xn_b = xn.astype(jnp.bfloat16)                        # bf16 operand for the MXU

    # ---- fused QKV projection: ONE (16,32)x(32,96) matmul ----
    # Wq columns are pre-scaled by 1/sqrt(HS) in the wrapper.
    qkv = jnp.dot(xn_b, wqkv_ref[...], preferred_element_type=jnp.float32)  # (BS, 3E)
    qkv_b = qkv.astype(jnp.bfloat16)

    # ---- fold heads into the M dimension: head-major (H*BS, HS) = (64, 8) ----
    # Static 8-lane slices + sublane concat (XLU work, slot otherwise idle).
    q_hm = jnp.concatenate([qkv_b[:, h * HS:(h + 1) * HS] for h in range(H)], axis=0)
    k_hm = jnp.concatenate([qkv_b[:, E + h * HS:E + (h + 1) * HS] for h in range(H)], axis=0)
    v_hm = jnp.concatenate([qkv_b[:, 2 * E + h * HS:2 * E + (h + 1) * HS] for h in range(H)], axis=0)

    # ---- attention: ONE scores matmul + ONE softmax + ONE PV matmul ----
    # q.k^T contracting last dims (MXU-side transpose of the RHS operand).
    s = lax.dot_general(q_hm, k_hm, (((1,), (1,)), ((), ())),
                        preferred_element_type=jnp.float32)                 # (64, 64)
    s = s + mask_ref[...]                                 # (head,batch)-block-diag + causal
    m = jnp.max(s, axis=-1, keepdims=True)
    p = jnp.exp(s - m)                                    # EUP
    denom = jnp.sum(p, axis=-1, keepdims=True)
    probs = (p * pl.reciprocal(denom, approx=True)).astype(jnp.bfloat16)    # EUP recip
    attn = jnp.dot(probs, v_hm, preferred_element_type=jnp.float32)         # (64, 8)

    # ---- un-fold heads onto lanes and do a single output projection ----
    o = jnp.concatenate([attn[h * BS:(h + 1) * BS, :] for h in range(H)], axis=1)  # (16, 32)
    proj = jnp.dot(o.astype(jnp.bfloat16), wp_ref[...],
                   preferred_element_type=jnp.float32) + bp_ref[...]

    x1 = x + proj                                         # residual 1

    # ---- RMSNorm 2 ----
    ms2 = jnp.mean(x1 * x1, axis=-1, keepdims=True)
    xn2 = x1 * lax.rsqrt(ms2 + EPS) * g2_ref[...]

    # ---- feed forward: Linear(E,4E) -> SiLU -> Linear(4E,E) ----
    h1 = jnp.dot(xn2.astype(jnp.bfloat16), w1_ref[...],
                 preferred_element_type=jnp.float32) + b1_ref[...]
    h1 = h1 * jax.nn.sigmoid(h1)                          # SiLU (f32)
    y = jnp.dot(h1.astype(jnp.bfloat16), w2_ref[...],
                preferred_element_type=jnp.float32) + b2_ref[...]

    o_ref[...] = (x1 + y).astype(o_ref.dtype)             # residual 2


def prepare_params(params):
    """One-time (init-time) preparation: weight fusion, bf16 casts, mask build."""
    wq, wk, wv, wp, bp, g1, g2, w1, b1, w2, b2 = params
    scale = 1.0 / math.sqrt(HS)

    # Fused QKV weight (E, 3E); attention scale folded into the Q columns.
    wqkv = jnp.concatenate([wq * scale, wk, wv], axis=1).astype(jnp.bfloat16)

    # Additive attention mask for the head-folded (64,64) score matrix:
    # block-diagonal over (head, batch) + causal within each sequence.  f32.
    hidx = jnp.repeat(jnp.arange(H), BS)                  # head id per folded row
    bidx = jnp.tile(jnp.repeat(jnp.arange(B), S), H)      # batch id per folded row
    pos = jnp.tile(jnp.arange(S), H * B)                  # position within sequence
    grp = hidx * B + bidx
    allowed = (grp[:, None] == grp[None, :]) & (pos[:, None] >= pos[None, :])
    mask = jnp.where(allowed, 0.0, -1e30).astype(jnp.float32)   # (HBS, HBS)

    return (mask, wqkv, wp.astype(jnp.bfloat16), bp, g1, g2,
            w1.astype(jnp.bfloat16), b1, w2.astype(jnp.bfloat16), b2)


@jax.jit
def transformer_block(x, prepared):
    mask, wqkv, wp_b, bp, g1, g2, w1_b, b1, w2_b, b2 = prepared
    x2d = x.reshape(BS, E)

    def full(shape):
        nd = len(shape)
        return pl.BlockSpec(shape, lambda i, _nd=nd: (0,) * _nd)

    out2d = pl.pallas_call(
        transformer_block_kernel,
        out_shape=jax.ShapeDtypeStruct((BS, E), x.dtype),
        grid_spec=pltpu.PrefetchScalarGridSpec(
            num_scalar_prefetch=0,
            grid=(1,),                                # single step: batch+heads folded into M
            in_specs=[
                full((BS, E)),                        # x
                full((HBS, HBS)),                     # additive mask
                full((E, 3 * E)),                     # fused Wqkv
                full((E, E)), full((1, E)),           # Wp, bp
                full((1, E)), full((1, E)),           # RMSNorm gains
                full((E, 4 * E)), full((1, 4 * E)),   # W1, b1
                full((4 * E, E)), full((1, E)),       # W2, b2
            ],
            out_specs=full((BS, E)),
        ),
        compiler_params=pltpu.CompilerParams(
            dimension_semantics=("arbitrary",)),
    )(x2d, mask, wqkv, wp_b, bp, g1, g2, w1_b, b1, w2_b, b2)

    return out2d.reshape(B, S, E)


# ----------------------------- pure-JAX reference ------------------------------
def reference_forward(x, params):
    wq, wk, wv, wp, bp, g1, g2, w1, b1, w2, b2 = params

    def rmsnorm(z, g):
        return z * lax.rsqrt(jnp.mean(z * z, axis=-1, keepdims=True) + EPS) * g

    xn = rmsnorm(x, g1)
    q = xn @ wq
    k = xn @ wk
    v = xn @ wv
    qh = q.reshape(B, S, H, HS).transpose(0, 2, 1, 3)
    kh = k.reshape(B, S, H, HS).transpose(0, 2, 1, 3)
    vh = v.reshape(B, S, H, HS).transpose(0, 2, 1, 3)
    scores = jnp.einsum("bhqd,bhkd->bhqk", qh, kh) / math.sqrt(HS)
    tri = jnp.tril(jnp.ones((S, S), dtype=bool))
    scores = jnp.where(tri, scores, -1e30)
    probs = jax.nn.softmax(scores, axis=-1)
    attn = jnp.einsum("bhqk,bhkd->bhqd", probs, vh).transpose(0, 2, 1, 3).reshape(B, S, E)
    x1 = x + (attn @ wp + bp)
    xn2 = rmsnorm(x1, g2)
    h1 = xn2 @ w1 + b1
    h1 = h1 * jax.nn.sigmoid(h1)
    return x1 + (h1 @ w2 + b2)


if __name__ == "__main__":
    key = jax.random.PRNGKey(0)
    keys = jax.random.split(key, 9)

    x = jax.random.normal(keys[0], (B, S, E), dtype=jnp.float32)

    # deterministic synthetic parameters (layout: (in_features, out_features))
    wq = jax.random.normal(keys[1], (E, E), dtype=jnp.float32) * 0.05
    wk = jax.random.normal(keys[2], (E, E), dtype=jnp.float32) * 0.05
    wv = jax.random.normal(keys[3], (E, E), dtype=jnp.float32) * 0.05
    wp = jax.random.normal(keys[4], (E, E), dtype=jnp.float32) * 0.05
    bp = (jax.random.normal(keys[5], (E,), dtype=jnp.float32) * 0.05).reshape(1, E)
    g1 = jnp.ones((1, E), dtype=jnp.float32)          # RMSNorm init: ones
    g2 = jnp.ones((1, E), dtype=jnp.float32)
    w1 = jax.random.normal(keys[6], (E, 4 * E), dtype=jnp.float32) * 0.05
    b1 = jnp.zeros((1, 4 * E), dtype=jnp.float32)
    w2 = jax.random.normal(keys[7], (4 * E, E), dtype=jnp.float32) * 0.05
    b2 = (jax.random.normal(keys[8], (E,), dtype=jnp.float32) * 0.05).reshape(1, E)

    params = (wq, wk, wv, wp, bp, g1, g2, w1, b1, w2, b2)

    # One-time prep (weight fusion / casts / mask) hoisted out of the call path.
    prepared = jax.tree_util.tree_map(jax.block_until_ready, prepare_params(params))

    out = jax.block_until_ready(transformer_block(x, prepared))
    ref = jax.block_until_ready(reference_forward(x, params))

    assert out.shape == (B, S, E)
    # bf16 MXU operands + approximate reciprocal -> looser tolerance vs f32 reference.
    max_err = float(jnp.max(jnp.abs(out - ref)))
    assert jnp.allclose(out, ref, rtol=2e-2, atol=2e-2), max_err

    print("KERNEL_OK")
</pallas_src>

<mosaic_0001>
module attributes {stable_mosaic.version = 11 : i64} {
  func.func @transformer_block_kernel(%arg0: i32, %arg1: memref<16x32xf32, #tpu.memory_space<vmem>>, %arg2: memref<64x64xf32, #tpu.memory_space<vmem>>, %arg3: memref<32x96xbf16, #tpu.memory_space<vmem>>, %arg4: memref<32x32xbf16, #tpu.memory_space<vmem>>, %arg5: memref<1x32xf32, #tpu.memory_space<vmem>>, %arg6: memref<1x32xf32, #tpu.memory_space<vmem>>, %arg7: memref<1x32xf32, #tpu.memory_space<vmem>>, %arg8: memref<32x128xbf16, #tpu.memory_space<vmem>>, %arg9: memref<1x128xf32, #tpu.memory_space<vmem>>, %arg10: memref<128x32xbf16, #tpu.memory_space<vmem>>, %arg11: memref<1x32xf32, #tpu.memory_space<vmem>>, %arg12: memref<16x32xf32, #tpu.memory_space<vmem>>) attributes {dimension_semantics = [#tpu.dimension_semantics<arbitrary>], iteration_bounds = array<i64: 1>, scalar_prefetch = 0 : i64, scratch_operands = 0 : i64, tpu.core_type = #tpu.core_type<tc>, window_params = [{pipeline_mode = #tpu.pipeline_mode<synchronous>, transform_indices = @transform_0, window_bounds = array<i64: 16, 32>}, {pipeline_mode = #tpu.pipeline_mode<synchronous>, transform_indices = @transform_1, window_bounds = array<i64: 64, 64>}, {pipeline_mode = #tpu.pipeline_mode<synchronous>, transform_indices = @transform_2, window_bounds = array<i64: 32, 96>}, {pipeline_mode = #tpu.pipeline_mode<synchronous>, transform_indices = @transform_3, window_bounds = array<i64: 32, 32>}, {pipeline_mode = #tpu.pipeline_mode<synchronous>, transform_indices = @transform_4, window_bounds = array<i64: 1, 32>}, {pipeline_mode = #tpu.pipeline_mode<synchronous>, transform_indices = @transform_5, window_bounds = array<i64: 1, 32>}, {pipeline_mode = #tpu.pipeline_mode<synchronous>, transform_indices = @transform_6, window_bounds = array<i64: 1, 32>}, {pipeline_mode = #tpu.pipeline_mode<synchronous>, transform_indices = @transform_7, window_bounds = array<i64: 32, 128>}, {pipeline_mode = #tpu.pipeline_mode<synchronous>, transform_indices = @transform_8, window_bounds = array<i64: 1, 128>}, {pipeline_mode = #tpu.pipeline_mode<synchronous>, transform_indices = @transform_9, window_bounds = array<i64: 128, 32>}, {pipeline_mode = #tpu.pipeline_mode<synchronous>, transform_indices = @transform_10, window_bounds = array<i64: 1, 32>}, {pipeline_mode = #tpu.pipeline_mode<synchronous>, transform_indices = @transform_11, window_bounds = array<i64: 16, 32>}]} {
    %c0 = arith.constant 0 : index
    %c0_0 = arith.constant 0 : index
    %0 = vector.load %arg1[%c0, %c0_0] : memref<16x32xf32, #tpu.memory_space<vmem>>, vector<16x32xf32>
    %1 = arith.mulf %0, %0 : vector<16x32xf32>
    %cst = arith.constant dense<0.000000e+00> : vector<16xf32>
    %2 = vector.multi_reduction <add>, %1, %cst [1] : vector<16x32xf32> to vector<16xf32>
    %3 = vector.shape_cast %2 : vector<16xf32> to vector<16x1xf32>
    %cst_1 = arith.constant 3.200000e+01 : f32
    %4 = vector.broadcast %cst_1 : f32 to vector<16x1xf32>
    %5 = arith.divf %3, %4 : vector<16x1xf32>
    %cst_2 = arith.constant 1.1920929E-7 : f32
    %6 = vector.broadcast %cst_2 : f32 to vector<16x1xf32>
    %7 = arith.addf %5, %6 : vector<16x1xf32>
    %8 = math.rsqrt %7 : vector<16x1xf32>
    %9 = vector.broadcast %8 : vector<16x1xf32> to vector<16x32xf32>
    %10 = arith.mulf %0, %9 : vector<16x32xf32>
    %c0_3 = arith.constant 0 : index
    %c0_4 = arith.constant 0 : index
    %11 = vector.load %arg6[%c0_3, %c0_4] : memref<1x32xf32, #tpu.memory_space<vmem>>, vector<1x32xf32>
    %12 = vector.broadcast %11 : vector<1x32xf32> to vector<16x32xf32>
    %13 = arith.mulf %10, %12 : vector<16x32xf32>
    %14 = arith.truncf %13 : vector<16x32xf32> to vector<16x32xbf16>
    %c0_5 = arith.constant 0 : index
    %c0_6 = arith.constant 0 : index
    %15 = vector.load %arg3[%c0_5, %c0_6] : memref<32x96xbf16, #tpu.memory_space<vmem>>, vector<32x96xbf16>
    %cst_7 = arith.constant dense<0.000000e+00> : vector<16x96xf32>
    %16 = tpu.matmul %14, %15, %cst_7 {dimension_numbers = #tpu.dot_dimension_numbers<[1], [0], [0], [1], [0, 0, 1, 1], [], []>} : vector<16x32xbf16>, vector<32x96xbf16>, vector<16x96xf32> -> vector<16x96xf32>
    %17 = arith.truncf %16 : vector<16x96xf32> to vector<16x96xbf16>
    %18 = vector.extract_strided_slice %17 {offsets = [0, 0], sizes = [16, 8], strides = [1, 1]} : vector<16x96xbf16> to vector<16x8xbf16>
    %19 = vector.extract_strided_slice %17 {offsets = [0, 8], sizes = [16, 8], strides = [1, 1]} : vector<16x96xbf16> to vector<16x8xbf16>
    %20 = vector.extract_strided_slice %17 {offsets = [0, 16], sizes = [16, 8], strides = [1, 1]} : vector<16x96xbf16> to vector<16x8xbf16>
    %21 = vector.extract_strided_slice %17 {offsets = [0, 24], sizes = [16, 8], strides = [1, 1]} : vector<16x96xbf16> to vector<16x8xbf16>
    %22 = tpu.concatenate %18, %19, %20, %21 in 0 : vector<16x8xbf16>, vector<16x8xbf16>, vector<16x8xbf16>, vector<16x8xbf16> -> vector<64x8xbf16>
    %23 = vector.extract_strided_slice %17 {offsets = [0, 32], sizes = [16, 8], strides = [1, 1]} : vector<16x96xbf16> to vector<16x8xbf16>
    %24 = vector.extract_strided_slice %17 {offsets = [0, 40], sizes = [16, 8], strides = [1, 1]} : vector<16x96xbf16> to vector<16x8xbf16>
    %25 = vector.extract_strided_slice %17 {offsets = [0, 48], sizes = [16, 8], strides = [1, 1]} : vector<16x96xbf16> to vector<16x8xbf16>
    %26 = vector.extract_strided_slice %17 {offsets = [0, 56], sizes = [16, 8], strides = [1, 1]} : vector<16x96xbf16> to vector<16x8xbf16>
    %27 = tpu.concatenate %23, %24, %25, %26 in 0 : vector<16x8xbf16>, vector<16x8xbf16>, vector<16x8xbf16>, vector<16x8xbf16> -> vector<64x8xbf16>
    %28 = vector.extract_strided_slice %17 {offsets = [0, 64], sizes = [16, 8], strides = [1, 1]} : vector<16x96xbf16> to vector<16x8xbf16>
    %29 = vector.extract_strided_slice %17 {offsets = [0, 72], sizes = [16, 8], strides = [1, 1]} : vector<16x96xbf16> to vector<16x8xbf16>
    %30 = vector.extract_strided_slice %17 {offsets = [0, 80], sizes = [16, 8], strides = [1, 1]} : vector<16x96xbf16> to vector<16x8xbf16>
    %31 = vector.extract_strided_slice %17 {offsets = [0, 88], sizes = [16, 8], strides = [1, 1]} : vector<16x96xbf16> to vector<16x8xbf16>
    %32 = tpu.concatenate %28, %29, %30, %31 in 0 : vector<16x8xbf16>, vector<16x8xbf16>, vector<16x8xbf16>, vector<16x8xbf16> -> vector<64x8xbf16>
    %cst_8 = arith.constant dense<0.000000e+00> : vector<64x64xf32>
    %33 = tpu.matmul %22, %27, %cst_8 {dimension_numbers = #tpu.dot_dimension_numbers<[1], [1], [0], [0], [0, 0, 1, 0], [], []>} : vector<64x8xbf16>, vector<64x8xbf16>, vector<64x64xf32> -> vector<64x64xf32>
    %c0_9 = arith.constant 0 : index
    %c0_10 = arith.constant 0 : index
    %34 = vector.load %arg2[%c0_9, %c0_10] : memref<64x64xf32, #tpu.memory_space<vmem>>, vector<64x64xf32>
    %35 = arith.addf %33, %34 : vector<64x64xf32>
    %cst_11 = arith.constant dense<0xFF800000> : vector<64xf32>
    %36 = vector.multi_reduction <maximumf>, %35, %cst_11 [1] : vector<64x64xf32> to vector<64xf32>
    %37 = vector.shape_cast %36 : vector<64xf32> to vector<64x1xf32>
    %38 = vector.broadcast %37 : vector<64x1xf32> to vector<64x64xf32>
    %39 = arith.subf %35, %38 : vector<64x64xf32>
    %40 = math.exp %39 : vector<64x64xf32>
    %cst_12 = arith.constant dense<0.000000e+00> : vector<64xf32>
    %41 = vector.multi_reduction <add>, %40, %cst_12 [1] : vector<64x64xf32> to vector<64xf32>
    %42 = vector.shape_cast %41 : vector<64xf32> to vector<64x1xf32>
    %43 = tpu.reciprocal %42 {approx = true} : vector<64x1xf32> -> vector<64x1xf32>
    %44 = vector.broadcast %43 : vector<64x1xf32> to vector<64x64xf32>
    %45 = arith.mulf %40, %44 : vector<64x64xf32>
    %46 = arith.truncf %45 : vector<64x64xf32> to vector<64x64xbf16>
    %cst_13 = arith.constant dense<0.000000e+00> : vector<64x8xf32>
    %47 = tpu.matmul %46, %32, %cst_13 {dimension_numbers = #tpu.dot_dimension_numbers<[1], [0], [0], [1], [0, 0, 1, 1], [], []>} : vector<64x64xbf16>, vector<64x8xbf16>, vector<64x8xf32> -> vector<64x8xf32>
    %48 = vector.extract_strided_slice %47 {offsets = [0, 0], sizes = [16, 8], strides = [1, 1]} : vector<64x8xf32> to vector<16x8xf32>
    %49 = vector.extract_strided_slice %47 {offsets = [16, 0], sizes = [16, 8], strides = [1, 1]} : vector<64x8xf32> to vector<16x8xf32>
    %50 = vector.extract_strided_slice %47 {offsets = [32, 0], sizes = [16, 8], strides = [1, 1]} : vector<64x8xf32> to vector<16x8xf32>
    %51 = vector.extract_strided_slice %47 {offsets = [48, 0], sizes = [16, 8], strides = [1, 1]} : vector<64x8xf32> to vector<16x8xf32>
    %52 = tpu.concatenate %48, %49, %50, %51 in 1 : vector<16x8xf32>, vector<16x8xf32>, vector<16x8xf32>, vector<16x8xf32> -> vector<16x32xf32>
    %53 = arith.truncf %52 : vector<16x32xf32> to vector<16x32xbf16>
    %c0_14 = arith.constant 0 : index
    %c0_15 = arith.constant 0 : index
    %54 = vector.load %arg4[%c0_14, %c0_15] : memref<32x32xbf16, #tpu.memory_space<vmem>>, vector<32x32xbf16>
    %cst_16 = arith.constant dense<0.000000e+00> : vector<16x32xf32>
    %55 = tpu.matmul %53, %54, %cst_16 {dimension_numbers = #tpu.dot_dimension_numbers<[1], [0], [0], [1], [0, 0, 1, 1], [], []>} : vector<16x32xbf16>, vector<32x32xbf16>, vector<16x32xf32> -> vector<16x32xf32>
    %c0_17 = arith.constant 0 : index
    %c0_18 = arith.constant 0 : index
    %56 = vector.load %arg5[%c0_17, %c0_18] : memref<1x32xf32, #tpu.memory_space<vmem>>, vector<1x32xf32>
    %57 = vector.broadcast %56 : vector<1x32xf32> to vector<16x32xf32>
    %58 = arith.addf %55, %57 : vector<16x32xf32>
    %59 = arith.addf %0, %58 : vector<16x32xf32>
    %60 = arith.mulf %59, %59 : vector<16x32xf32>
    %cst_19 = arith.constant dense<0.000000e+00> : vector<16xf32>
    %61 = vector.multi_reduction <add>, %60, %cst_19 [1] : vector<16x32xf32> to vector<16xf32>
    %62 = vector.shape_cast %61 : vector<16xf32> to vector<16x1xf32>
    %cst_20 = arith.constant 3.200000e+01 : f32
    %63 = vector.broadcast %cst_20 : f32 to vector<16x1xf32>
    %64 = arith.divf %62, %63 : vector<16x1xf32>
    %cst_21 = arith.constant 1.1920929E-7 : f32
    %65 = vector.broadcast %cst_21 : f32 to vector<16x1xf32>
    %66 = arith.addf %64, %65 : vector<16x1xf32>
    %67 = math.rsqrt %66 : vector<16x1xf32>
    %68 = vector.broadcast %67 : vector<16x1xf32> to vector<16x32xf32>
    %69 = arith.mulf %59, %68 : vector<16x32xf32>
    %c0_22 = arith.constant 0 : index
    %c0_23 = arith.constant 0 : index
    %70 = vector.load %arg7[%c0_22, %c0_23] : memref<1x32xf32, #tpu.memory_space<vmem>>, vector<1x32xf32>
    %71 = vector.broadcast %70 : vector<1x32xf32> to vector<16x32xf32>
    %72 = arith.mulf %69, %71 : vector<16x32xf32>
    %73 = arith.truncf %72 : vector<16x32xf32> to vector<16x32xbf16>
    %c0_24 = arith.constant 0 : index
    %c0_25 = arith.constant 0 : index
    %74 = vector.load %arg8[%c0_24, %c0_25] : memref<32x128xbf16, #tpu.memory_space<vmem>>, vector<32x128xbf16>
    %cst_26 = arith.constant dense<0.000000e+00> : vector<16x128xf32>
    %75 = tpu.matmul %73, %74, %cst_26 {dimension_numbers = #tpu.dot_dimension_numbers<[1], [0], [0], [1], [0, 0, 1, 1], [], []>} : vector<16x32xbf16>, vector<32x128xbf16>, vector<16x128xf32> -> vector<16x128xf32>
    %c0_27 = arith.constant 0 : index
    %c0_28 = arith.constant 0 : index
    %76 = vector.load %arg9[%c0_27, %c0_28] : memref<1x128xf32, #tpu.memory_space<vmem>>, vector<1x128xf32>
    %77 = vector.broadcast %76 : vector<1x128xf32> to vector<16x128xf32>
    %78 = arith.addf %75, %77 : vector<16x128xf32>
    %79 = arith.negf %78 : vector<16x128xf32>
    %80 = math.exp %79 : vector<16x128xf32>
    %cst_29 = arith.constant 1.000000e+00 : f32
    %81 = vector.broadcast %cst_29 : f32 to vector<16x128xf32>
    %82 = arith.addf %81, %80 : vector<16x128xf32>
    %83 = arith.divf %81, %82 : vector<16x128xf32>
    %84 = arith.mulf %78, %83 : vector<16x128xf32>
    %85 = arith.truncf %84 : vector<16x128xf32> to vector<16x128xbf16>
    %c0_30 = arith.constant 0 : index
    %c0_31 = arith.constant 0 : index
    %86 = vector.load %arg10[%c0_30, %c0_31] : memref<128x32xbf16, #tpu.memory_space<vmem>>, vector<128x32xbf16>
    %cst_32 = arith.constant dense<0.000000e+00> : vector<16x32xf32>
    %87 = tpu.matmul %85, %86, %cst_32 {dimension_numbers = #tpu.dot_dimension_numbers<[1], [0], [0], [1], [0, 0, 1, 1], [], []>} : vector<16x128xbf16>, vector<128x32xbf16>, vector<16x32xf32> -> vector<16x32xf32>
    %c0_33 = arith.constant 0 : index
    %c0_34 = arith.constant 0 : index
    %88 = vector.load %arg11[%c0_33, %c0_34] : memref<1x32xf32, #tpu.memory_space<vmem>>, vector<1x32xf32>
    %89 = vector.broadcast %88 : vector<1x32xf32> to vector<16x32xf32>
    %90 = arith.addf %87, %89 : vector<16x32xf32>
    %91 = arith.addf %59, %90 : vector<16x32xf32>
    %c0_35 = arith.constant 0 : index
    %c0_36 = arith.constant 0 : index
    %92 = vector.load %arg12[%c0_35, %c0_36] : memref<16x32xf32, #tpu.memory_space<vmem>>, vector<16x32xf32>
    tpu.vector_store %arg12[%c0_35, %c0_36], %91 {strides = array<i32>} : memref<16x32xf32, #tpu.memory_space<vmem>>, vector<16x32xf32>,
    return
  }
  func.func @transform_0(%arg0: i32) -> (i32, i32) {
    %c0_i32 = arith.constant 0 : i32
    %c0_i32_0 = arith.constant 0 : i32
    %c0_i32_1 = arith.constant 0 : i32
    return %c0_i32, %c0_i32_0 : i32, i32
  }
  func.func @transform_1(%arg0: i32) -> (i32, i32) {
    %c0_i32 = arith.constant 0 : i32
    %c0_i32_0 = arith.constant 0 : i32
    %c0_i32_1 = arith.constant 0 : i32
    return %c0_i32, %c0_i32_0 : i32, i32
  }
  func.func @transform_2(%arg0: i32) -> (i32, i32) {
    %c0_i32 = arith.constant 0 : i32
    %c0_i32_0 = arith.constant 0 : i32
    %c0_i32_1 = arith.constant 0 : i32
    return %c0_i32, %c0_i32_0 : i32, i32
  }
  func.func @transform_3(%arg0: i32) -> (i32, i32) {
    %c0_i32 = arith.constant 0 : i32
    %c0_i32_0 = arith.constant 0 : i32
    %c0_i32_1 = arith.constant 0 : i32
    return %c0_i32, %c0_i32_0 : i32, i32
  }
  func.func @transform_4(%arg0: i32) -> (i32, i32) {
    %c0_i32 = arith.constant 0 : i32
    %c0_i32_0 = arith.constant 0 : i32
    %c0_i32_1 = arith.constant 0 : i32
    return %c0_i32, %c0_i32_0 : i32, i32
  }
  func.func @transform_5(%arg0: i32) -> (i32, i32) {
    %c0_i32 = arith.constant 0 : i32
    %c0_i32_0 = arith.constant 0 : i32
    %c0_i32_1 = arith.constant 0 : i32
    return %c0_i32, %c0_i32_0 : i32, i32
  }
  func.func @transform_6(%arg0: i32) -> (i32, i32) {
    %c0_i32 = arith.constant 0 : i32
    %c0_i32_0 = arith.constant 0 : i32
    %c0_i32_1 = arith.constant 0 : i32
    return %c0_i32, %c0_i32_0 : i32, i32
  }
  func.func @transform_7(%arg0: i32) -> (i32, i32) {
    %c0_i32 = arith.constant 0 : i32
    %c0_i32_0 = arith.constant 0 : i32
    %c0_i32_1 = arith.constant 0 : i32
    return %c0_i32, %c0_i32_0 : i32, i32
  }
  func.func @transform_8(%arg0: i32) -> (i32, i32) {
    %c0_i32 = arith.constant 0 : i32
    %c0_i32_0 = arith.constant 0 : i32
    %c0_i32_1 = arith.constant 0 : i32
    return %c0_i32, %c0_i32_0 : i32, i32
  }
  func.func @transform_9(%arg0: i32) -> (i32, i32) {
    %c0_i32 = arith.constant 0 : i32
    %c0_i32_0 = arith.constant 0 : i32
    %c0_i32_1 = arith.constant 0 : i32
    return %c0_i32, %c0_i32_0 : i32, i32
  }
  func.func @transform_10(%arg0: i32) -> (i32, i32) {
    %c0_i32 = arith.constant 0 : i32
    %c0_i32_0 = arith.constant 0 : i32
    %c0_i32_1 = arith.constant 0 : i32
    return %c0_i32, %c0_i32_0 : i32, i32
  }
  func.func @transform_11(%arg0: i32) -> (i32, i32) {
    %c0_i32 = arith.constant 0 : i32
    %c0_i32_0 = arith.constant 0 : i32
    %c0_i32_1 = arith.constant 0 : i32
    return %c0_i32, %c0_i32_0 : i32, i32
  }
}

</mosaic_0001>

<bundles_post_ra>
// kernel: transformer_block.1
= control target key start
LH: loop header
LB: loop body
LE: loop exit
PB: predicated region body
PF: predicated region fallthrough
CT: control target
= control target key end

     0   :  { %16 = vsyncpa [#allocation3], 0  ;;  %s1234_s0 = inlined_call_operand.vmem [shape: f32[16,32], index: 0, kind: input, shape index: {}]   ;;  %s1235_s1 = inlined_call_operand.vmem [shape: f32[64,64], index: 1, kind: input, shape index: {}]   ;;  %s1236_s2 = inlined_call_operand.hbm [shape: bf16[32,96], index: 2, kind: input, shape index: {}]   ;;  %s1237_s3 = inlined_call_operand.hbm [shape: bf16[32,32], index: 3, kind: input, shape index: {}]   ;;  %s1238_s4 = inlined_call_operand.vmem [shape: f32[1,32], index: 4, kind: input, shape index: {}]   ;;  %s1239_s5 = inlined_call_operand.vmem [shape: f32[1,32], index: 5, kind: input, shape index: {}]   ;;  %s1240_s6 = inlined_call_operand.vmem [shape: f32[1,32], index: 6, kind: input, shape index: {}]   ;;  %s1241_s7 = inlined_call_operand.hbm [shape: bf16[32,128], index: 7, kind: input, shape index: {}]   ;;  %s1242_s8 = inlined_call_operand.vmem [shape: f32[1,128], index: 8, kind: input, shape index: {}]   ;;  %s1243_s9 = inlined_call_operand.vmem [shape: bf16[128,32], index: 9, kind: input, shape index: {}]   ;;  %s1244_s10 = inlined_call_operand.vmem [shape: f32[1,32], index: 10, kind: input, shape index: {}]   ;;  %s1245_s11 = inlined_call_operand.hbm [shape: f32[16,32], index: 11, kind: output, shape index: {}]  }
   0x1   :  { %17 = vsyncpa [#allocation6], 0 }
   0x2   :  { %18 = vsyncpa [#allocation4], 0  ;;  %s40_s19 = sshll.u32 %s1237_s3, 4  ;;  %s971_s20 = smov [#allocation5]   ;;  %s41_s19 = int_to_ptr.hbm [resolvable:$true] %s40_s19 }
   0x3   :  { %s42_s21 = sshll.u32 %s971_s20, 4  ;;  %s27_s24 = sshll.u32 %s1236_s2, 4  ;;  %s43_s21 = int_to_ptr.vmem [resolvable:$true] %s42_s21  ;;  %s28_s24 = int_to_ptr.hbm [resolvable:$true] %s27_s24 }
   0x4   :  { %s972_s25 = smov 64   ;;  %s973_s26 = smov 4  }
   0x5   :  { %48 = dma.hbm_to_vmem [thread:$0]  %s41_s19, 256, %s43_s21, [#allocation6], %s972_s25, %s972_s25, %s973_s26  }
   0x6   :  { %s974_s27 = smov [#allocation2]   ;;  %s59_s3 = sshll.u32 %s1241_s7, 4  ;;  %s60_s3 = int_to_ptr.hbm [resolvable:$true] %s59_s3 }
   0x7   :  { %s29_s28 = sshll.u32 %s974_s27, 4  ;;  %s975_s12 = smov [#allocation7]   ;;  %s30_s28 = int_to_ptr.vmem [resolvable:$true] %s29_s28 }
   0x8   :  { %35 = dma.hbm_to_vmem [thread:$0]  %s28_s24, 256, %s30_s28, [#allocation3], %s972_s25, %s972_s25, %s973_s26  }
   0x9   :  { %s61_s13 = sshll.u32 %s975_s12, 4  ;;  %s62_s13 = int_to_ptr.vmem [resolvable:$true] %s61_s13 }
   0xa   :  { %67 = dma.hbm_to_vmem [thread:$0]  %s60_s3, 256, %s62_s13, [#allocation6], %s972_s25, %s972_s25, %s973_s26  }
   0xb   :  { %965 = dma.done.wait [#allocation3], 256  }
   0xc   :  { %966 = vsyncadd [#allocation3], 4294967040 }
   0xd   :  { %967 = dma.done.wait [#allocation6], 512  }
   0xe   :  { %968 = vsyncadd [#allocation6], 4294966784  ;;  %v1064_v0 = vld [vmem:[%s1234_s0] sm:$0xff]  ;;  %vm91_vm0 = vcmask 261120   ;;  %v1071_v2 = vld [vmem:[%s1234_s0 + $0x8] sm:$0xff]  ;;  %v976_v6 = vmov 32.0  }
   0xf   :  { %v89_v1 = vmul.f32 %v1064_v0, %v1064_v0  ;;  %v90_v4 = vmul.f32 %v1071_v2, %v1071_v2  ;;  %819 = vrcp.f32 %v976_v6  ;;  %v767_v12 = vld [vmem:[#allocation2 + $0x8] sm:$0xff]  ;;  %v766_v14 = vld [vmem:[#allocation2] sm:$0xff]  ;;  %s977_s17 = smov 120   ;;  %s979_s18 = smov 112   ;;  %vm200_vm8 = vcmask 64512   ;;  %v186_v61 = vld [vmem:[%s1235_s1 + $0x10] sm:$0xff] }
  0x10   :  { %163 = vmatpush.bf16.msra.mxu0 %v767_v12  ;;  %v814_v35 = vld [vmem:[%s1239_s5] ss:$0 sm:$0xff]  ;;  %s978_s5 = smov 104   ;;  %s980_s19 = smov 96   ;;  %vm254_vm9 = vcmask 523264   ;;  %v185_v6 = vld [vmem:[%s1235_s1 + $0x8] sm:$0xff] }
  0x11   :  { %v92_v3 = vsel %vm91_vm0, %v89_v1, 0.0  ;;  %v95_v5 = vsel %vm91_vm0, %v90_v4, 0.0  ;;  %v184_v60 = vld [vmem:[%s1235_s1] sm:$0xff]  ;;  %s983_s15 = smov 24   ;;  %vm426_vm10 = vcmask 130048   ;;  %vm429_vm11 = vcmask 195584  }
  0x12   :  { %93 = vadd.xlane.f32.xlu0 %v92_v3  ;;  %v188_v12 = vld [vmem:[%s1235_s1 + $0x20] sm:$0xff]  ;;  %s984_s14 = smov [#allocation8]   ;;  %s683_s0 = sshll.u32 %s1245_s11, 4  ;;  %s684_s0 = int_to_ptr.hbm [resolvable:$true] %s683_s0 }
  0x13   :  { %s681_s7 = sshll.u32 %s984_s14, 4  ;;  %s682_s7 = int_to_ptr.vmem [resolvable:$true] %s681_s7 }
  0x14   :  { %164 = vmatpush.bf16.msra.mxu0 %v766_v14 }
  0x15   :  { %v820_v7 = vpop.eup %819 }
  0x16   :  { %v99_v8 = vmul.f32 32.0, %v820_v7  ;;  %vm103_vm1 = vweird.f32 %v820_v7 }
  0x18   :  { %v100_v9 = vsub.f32 1.0, %v99_v8 }
  0x1a   :  { %96 = vadd.xlane.f32.xlu0 %v95_v5  ;;  %v101_v10 = vmul.f32 %v820_v7, %v100_v9 }
  0x1c   :  { %v102_v11 = vadd.f32 %v820_v7, %v101_v10 }
  0x1e   :  { %v1077_v13 = vsel %vm103_vm1, %v820_v7, %v102_v11  ;;  %v187_v11 = vld [vmem:[%s1235_s1 + $0x18] sm:$0xff] }
  0x85   :  { %v94_v15 = vpop.xlane.xlu0 %93 }
  0x86   :  { %v105_v16 = vmul.f32 %v1077_v13, %v94_v15 }
  0x88   :  { %v107_v17 = vadd.f32 1.1920929e-07, %v105_v16 }
  0x8a   :  { %821 = vrsqrt.f32 %v107_v17  ;;  %vm115_vm3 = vweird.f32 %v107_v17 }
  0x8d   :  { %v97_v18 = vpop.xlane.xlu0 %96 }
  0x8e   :  { %v106_v19 = vmul.f32 %v1077_v13, %v97_v18 }
  0x90   :  { %v822_v20 = vpop.eup %821  ;;  %v108_v21 = vadd.f32 1.1920929e-07, %v106_v19  ;;  %v189_v19 = vld [vmem:[%s1235_s1 + $0x28] sm:$0xff] }
  0x91   :  { %v110_v22 = vmul.f32 %v822_v20, %v107_v17  ;;  %vm116_vm2 = vweird.f32 %v822_v20 }
  0x92   :  { %823 = vrsqrt.f32 %v108_v21  ;;  %vm117_vm4 = vmor %vm115_vm3, %vm116_vm2  ;;  %vm125_vm6 = vweird.f32 %v108_v21 }
  0x93   :  { %v111_v23 = vmul.f32 %v822_v20, %v110_v22 }
  0x95   :  { %v112_v24 = vmul.f32 0.5, %v111_v23  ;;  %v190_v23 = vld [vmem:[%s1235_s1 + $0x30] sm:$0xff] }
  0x97   :  { %v113_v25 = vsub.f32 1.5, %v112_v24 }
  0x98   :  { %v824_v26 = vpop.eup %823 }
  0x99   :  { %v120_v27 = vmul.f32 %v824_v26, %v108_v21  ;;  %v114_v28 = vmul.f32 %v822_v20, %v113_v25  ;;  %vm126_vm5 = vweird.f32 %v824_v26 }
  0x9a   :  { %vm127_vm7 = vmor %vm125_vm6, %vm126_vm5 }
  0x9b   :  { %v121_v29 = vmul.f32 %v824_v26, %v120_v27  ;;  %v118_v31 = vsel %vm117_vm4, %v822_v20, %v114_v28  ;;  %v191_v27 = vld [vmem:[%s1235_s1 + $0x38] sm:$0xff]  ;;  %s981_s1 = smov 8  }
  0x9c   :  { %v129_v34 = vmul.f32 %v118_v31, %v1064_v0 }
  0x9d   :  { %v122_v30 = vmul.f32 0.5, %v121_v29 }
  0x9e   :  { %v135_v38 = vmul.f32 %v814_v35, %v129_v34 }
  0x9f   :  { %v123_v32 = vsub.f32 1.5, %v122_v30 }
  0xa1   :  { %v124_v33 = vmul.f32 %v824_v26, %v123_v32 }
  0xa3   :  { %v128_v36 = vsel %vm127_vm7, %v824_v26, %v124_v33 }
  0xa4   :  { %v130_v37 = vmul.f32 %v128_v36, %v1071_v2 }
  0xa6   :  { %v136_v39 = vmul.f32 %v814_v35, %v130_v37 }
  0xa8   :  { %v137_v40 = vpack.c.bf16 %v136_v39, %v135_v38 }
  0xaa   :  { %705 = vmatmul.msk.bf16.vlgmr.msra.gmra.mxu0 %vm91_vm0, %v137_v40 }
 0x127   :  { %v166_v41 = vpop.f32.mrf.mxu0 }
 0x128   :  { %v171_v42 = vpack.c.bf16 %v166_v41, %v166_v41 }
 0x12a   :  { %v175_v45 = vunpack.c.l.b16 %v171_v42 }
 0x12f   :  { %v168_v43 = vpop.f32.mrf.mxu0 }
 0x130   :  { %v172_v44 = vpack.c.bf16 %v168_v43, %v168_v43 }
 0x132   :  { %v176_v46 = vunpack.c.l.b16 %v172_v44 }
 0x134   :  { %v1087_v47 = vpack.c.b16 %v176_v46, %v175_v45 }
 0x136   :  { %178 = vrot.lane.b32.xlu2 %v1087_v47, %s977_s17  ;;  %182 = vrot.lane.b32.xlu1 %v1087_v47, %s978_s5 }
 0x13e   :  { %180 = vrot.lane.b32.xlu1 %v1087_v47, %s979_s18 }
 0x190   :  { %v1092_v48 = vpop.permute.xlu2 %178 }
 0x191   :  { %194 = vrot.lane.b32.xlu1 %v1092_v48, %s980_s19 }
 0x1a8   :  { %v183_v49 = vpop.permute.xlu1 %182 }
 0x1a9   :  { %198 = vrot.lane.b32.xlu2 %v183_v49, %s980_s19 }
 0x1b0   :  { %v1095_v50 = vpop.permute.xlu1 %180 }
 0x1b1   :  { %192 = vrot.lane.b32.xlu2 %v1087_v47, %s980_s19  ;;  %196 = vrot.lane.b32.xlu0 %v1095_v50, %s980_s19 }
 0x1b9   :  { %353 = vrot.lane.b32.xlu2 %v183_v49, %s972_s25 }
 0x203   :  { %v199_v51 = vpop.permute.xlu2 %198  ;;  %v195_v57 = vpop.permute.xlu1 %194 }
 0x204   :  { %v223_v52 = vsel %vm200_vm8, %v199_v51, 0  ;;  %v217_v58 = vsel %vm200_vm8, %v195_v57, 0 }
 0x205   :  { %229 = vmatpush.bf16.xpose.msrb.mxu0 %v223_v52  ;;  %780 = vmatpush.bf16.xpose.msra.mxu1 %v223_v52 }
 0x20b   :  { %v193_v53 = vpop.permute.xlu2 %192 }
 0x20c   :  { %v214_v59 = vsel %vm200_vm8, %v193_v53, 0 }
 0x213   :  { %v354_v54 = vpop.permute.xlu2 %353 }
 0x214   :  { %375 = vmatpush.bf16.msra.mxu2 %v354_v54 }
 0x223   :  { %v197_v55 = vpop.permute.xlu0 %196 }
 0x224   :  { %v220_v56 = vsel %vm200_vm8, %v197_v55, 0 }
 0x225   :  { %230 = vmatpush.bf16.xpose.msrb.mxu0 %v220_v56  ;;  %781 = vmatpush.bf16.xpose.msra.mxu1 %v220_v56 }
 0x22d   :  { %231 = vmatpush.bf16.xpose.msrb.mxu0 %v217_v58  ;;  %782 = vmatpush.bf16.xpose.msra.mxu1 %v217_v58 }
 0x235   :  { %232 = vmatpush.bf16.xpose.msrb.mxu0 %v214_v59  ;;  %783 = vmatpush.bf16.xpose.msra.mxu1 %v214_v59 }
 0x23c   :  { %706 = vmatmul.msk.bf16.vlgmr.msrb.gmra.mxu0 %vm200_vm8, %v1087_v47  ;;  %707 = vmatmul.msk.bf16.vlgmr.msra.gmra.mxu1 %vm200_vm8, %v1092_v48 }
 0x24c   :  { %708 = vmatmul.msk.bf16.gmra.mxu1 %vm200_vm8, %v1095_v50 }
 0x25c   :  { %709 = vmatmul.msk.bf16.gmra.mxu1 %vm200_vm8, %v183_v49 }
 0x2b9   :  { %v234_v62 = vpop.f32.mrf.mxu0  ;;  %v239_v63 = vpop.f32.mrf.mxu1 }
 0x2ba   :  { %v235_v1 = vadd.f32 %v234_v62, %v184_v60  ;;  %v240_v3 = vadd.f32 %v239_v63, %v186_v61 }
 0x2bc   :  { %v261_v4 = vsel %vm254_vm9, %v240_v3, -inf  ;;  %v255_v5 = vsel %vm254_vm9, %v235_v1, -inf }
 0x2bd   :  { %262 = vmax.xlane.f32.xlu0 %v261_v4  ;;  %256 = vmax.xlane.f32.xlu1 %v255_v5 }
 0x2c1   :  { %v236_v7 = vpop.f32.mrf.mxu0  ;;  %v241_v8 = vpop.f32.mrf.mxu1 }
 0x2c2   :  { %v237_v9 = vadd.f32 %v236_v7, %v185_v6  ;;  %v242_v14 = vadd.f32 %v241_v8, %v187_v11 }
 0x2c4   :  { %v258_v10 = vsel %vm254_vm9, %v237_v9, -inf  ;;  %v264_v17 = vsel %vm254_vm9, %v242_v14, -inf }
 0x2c5   :  { %259 = vmax.xlane.f32.xlu2 %v258_v10 }
 0x2c9   :  { %v244_v15 = vpop.f32.mrf.mxu1 }
 0x2ca   :  { %v245_v16 = vadd.f32 %v244_v15, %v188_v12 }
 0x2cc   :  { %v267_v18 = vsel %vm254_vm9, %v245_v16, -inf }
 0x2cd   :  { %265 = vmax.xlane.f32.xlu2 %v264_v17  ;;  %268 = vmax.xlane.f32.xlu1 %v267_v18 }
 0x2d1   :  { %v246_v20 = vpop.f32.mrf.mxu1 }
 0x2d2   :  { %v247_v21 = vadd.f32 %v246_v20, %v189_v19 }
 0x2d4   :  { %v270_v22 = vsel %vm254_vm9, %v247_v21, -inf }
 0x2d5   :  { %271 = vmax.xlane.f32.xlu2 %v270_v22 }
 0x2d9   :  { %v249_v24 = vpop.f32.mrf.mxu1 }
 0x2da   :  { %v250_v25 = vadd.f32 %v249_v24, %v190_v23 }
 0x2dc   :  { %v273_v26 = vsel %vm254_vm9, %v250_v25, -inf }
 0x2dd   :  { %274 = vmax.xlane.f32.xlu1 %v273_v26 }
 0x2e1   :  { %v251_v28 = vpop.f32.mrf.mxu1 }
 0x2e2   :  { %v252_v29 = vadd.f32 %v251_v28, %v191_v27 }
 0x2e4   :  { %v276_v30 = vsel %vm254_vm9, %v252_v29, -inf }
 0x2e5   :  { %277 = vmax.xlane.f32.xlu0 %v276_v30 }
 0x2ed   :  { %347 = vrot.lane.b32.xlu2 %v1087_v47, %s972_s25 }
 0x330   :  { %v263_v31 = vpop.xlane.xlu0 %262  ;;  %v257_v32 = vpop.xlane.xlu1 %256 }
 0x331   :  { %v281_v33 = vsub.f32 %v240_v3, %v263_v31  ;;  %v279_v34 = vsub.f32 %v235_v1, %v257_v32 }
 0x333   :  { %v291_v35 = vmul.f32 1.442695, %v281_v33  ;;  %v287_v36 = vmul.f32 1.442695, %v279_v34 }
 0x335   :  { %825 = vpow2.f32 %v291_v35 }
 0x336   :  { %827 = vpow2.f32 %v287_v36 }
 0x338   :  { %v260_v37 = vpop.xlane.xlu2 %259 }
 0x339   :  { %v280_v38 = vsub.f32 %v237_v9, %v260_v37 }
 0x33b   :  { %v1145_v39 = vpop.eup %825  ;;  %v289_v40 = vmul.f32 1.442695, %v280_v38 }
 0x33c   :  { %v828_v41 = vpop.eup %827  ;;  %v309_v42 = vsel %vm254_vm9, %v1145_v39, 0.0 }
 0x33d   :  { %829 = vpow2.f32 %v289_v40  ;;  %310 = vadd.xlane.f32.xlu2 %v309_v42  ;;  %v303_v43 = vsel %vm254_vm9, %v828_v41, 0.0 }
 0x33e   :  { %304 = vadd.xlane.f32.xlu1 %v303_v43 }
 0x340   :  { %v266_v44 = vpop.xlane.xlu2 %265  ;;  %v269_v54 = vpop.xlane.xlu1 %268 }
 0x341   :  { %v283_v55 = vsub.f32 %v245_v16, %v269_v54  ;;  %v282_v56 = vsub.f32 %v242_v14, %v266_v44  ;;  %v769_v54 = vld [vmem:[#allocation5 + $0x8] sm:$0xff] }
 0x342   :  { %462 = vmatpush.bf16.msra.mxu3 %v769_v54 }
 0x343   :  { %v830_v45 = vpop.eup %829  ;;  %v295_v57 = vmul.f32 1.442695, %v283_v55  ;;  %v293_v59 = vmul.f32 1.442695, %v282_v56  ;;  %v768_v55 = vld [vmem:[#allocation5] sm:$0xff] }
 0x344   :  { %v306_v46 = vsel %vm254_vm9, %v830_v45, 0.0 }
 0x345   :  { %307 = vadd.xlane.f32.xlu0 %v306_v46 }
 0x346   :  { %463 = vmatpush.bf16.msra.mxu3 %v768_v55 }
 0x348   :  { %v272_v47 = vpop.xlane.xlu2 %271 }
 0x349   :  { %v284_v49 = vsub.f32 %v247_v21, %v272_v47 }
 0x34b   :  { %v297_v51 = vmul.f32 1.442695, %v284_v49 }
 0x34d   :  { %831 = vpow2.f32 %v297_v51 }
 0x34e   :  { %833 = vpow2.f32 %v295_v57 }
 0x34f   :  { %835 = vpow2.f32 %v293_v59 }
 0x350   :  { %v275_v60 = vpop.xlane.xlu1 %274  ;;  %v348_v17 = vpop.permute.xlu2 %347 }
 0x351   :  { %v285_v62 = vsub.f32 %v250_v25, %v275_v60 }
 0x353   :  { %v1151_v52 = vpop.eup %831  ;;  %v299_v3 = vmul.f32 1.442695, %v285_v62 }
 0x354   :  { %v318_v53 = vsel %vm254_vm9, %v1151_v52, 0.0  ;;  %v834_v1 = vpop.eup %833 }
 0x355   :  { %319 = vadd.xlane.f32.xlu2 %v318_v53  ;;  %v836_v4 = vpop.eup %835 }
 0x357   :  { %351 = vrot.lane.b32.xlu1 %v1095_v50, %s972_s25  ;;  %v315_v50 = vsel %vm254_vm9, %v834_v1, 0.0 }
 0x358   :  { %v278_v58 = vpop.xlane.xlu0 %277 }
 0x359   :  { %349 = vrot.lane.b32.xlu0 %v1092_v48, %s972_s25  ;;  %v286_v61 = vsub.f32 %v252_v29, %v278_v58  ;;  %v312_v48 = vsel %vm254_vm9, %v836_v4, 0.0  ;;  %s982_s25 = smov 16  }
 0x35b   :  { %v301_v63 = vmul.f32 1.442695, %v286_v61 }
 0x35d   :  { %837 = vpow2.f32 %v301_v63 }
 0x35e   :  { %839 = vpow2.f32 %v299_v3 }
 0x363   :  { %v838_v5 = vpop.eup %837 }
 0x364   :  { %v840_v6 = vpop.eup %839  ;;  %v324_v7 = vsel %vm254_vm9, %v838_v5, 0.0 }
 0x365   :  { %v321_v8 = vsel %vm254_vm9, %v840_v6, 0.0 }
 0x381   :  { %316 = vadd.xlane.f32.xlu1 %v315_v50 }
 0x383   :  { %313 = vadd.xlane.f32.xlu0 %v312_v48 }
 0x389   :  { %325 = vadd.xlane.f32.xlu1 %v324_v7 }
 0x38b   :  { %322 = vadd.xlane.f32.xlu0 %v321_v8  ;;  %v815_v8 = vld [vmem:[%s1238_s4] ss:$0 sm:$0xff] }
 0x3b0   :  { %v311_v20 = vpop.xlane.xlu2 %310 }
 0x3b1   :  { %v305_v9 = vpop.xlane.xlu1 %304 }
 0x3b8   :  { %v308_v10 = vpop.xlane.xlu0 %307 }
 0x3b9   :  { %841 = vrcp.f32 %v308_v10 }
 0x3ba   :  { %843 = vrcp.f32 %v305_v9 }
 0x3bb   :  { %845 = vrcp.f32 %v311_v20  ;;  %v771_v20 = vld [vmem:[#allocation7 + $0x8] sm:$0xff] }
 0x3bc   :  { %542 = vmatpush.bf16.msra.mxu0 %v771_v20 }
 0x3bf   :  { %v842_v14 = vpop.eup %841 }
 0x3c0   :  { %v844_v15 = vpop.eup %843  ;;  %v336_v16 = vmul.f32 %v842_v14, %v830_v45 }
 0x3c1   :  { %v335_v18 = vmul.f32 %v844_v15, %v828_v41  ;;  %v846_v22 = vpop.eup %845 }
 0x3c2   :  { %v337_v24 = vmul.f32 %v846_v22, %v1145_v39  ;;  %v770_v22 = vld [vmem:[#allocation7] sm:$0xff] }
 0x3c3   :  { %v343_v19 = vpack.c.bf16 %v336_v16, %v335_v18  ;;  %543 = vmatpush.bf16.msra.mxu0 %v770_v22 }
 0x3c8   :  { %v320_v28 = vpop.xlane.xlu2 %319 }
 0x3c9   :  { %v352_v11 = vpop.permute.xlu1 %351 }
 0x3ca   :  { %376 = vmatpush.bf16.msra.mxu2 %v352_v11 }
 0x3cb   :  { %v350_v12 = vpop.permute.xlu0 %349 }
 0x3ce   :  { %377 = vmatpush.bf16.msra.mxu2 %v350_v12 }
 0x3d2   :  { %378 = vmatpush.bf16.msra.mxu2 %v348_v17 }
 0x3d5   :  { %710 = vmatmul.msk.bf16.vlgmr.msra.gmra.mxu2 %vm254_vm9, %v343_v19 }
 0x3f4   :  { %v317_v26 = vpop.xlane.xlu1 %316 }
 0x3f6   :  { %v314_v21 = vpop.xlane.xlu0 %313 }
 0x3f7   :  { %847 = vrcp.f32 %v314_v21 }
 0x3f8   :  { %849 = vrcp.f32 %v317_v26 }
 0x3f9   :  { %851 = vrcp.f32 %v320_v28 }
 0x3fc   :  { %v326_v35 = vpop.xlane.xlu1 %325 }
 0x3fd   :  { %v848_v23 = vpop.eup %847 }
 0x3fe   :  { %v338_v25 = vmul.f32 %v848_v23, %v836_v4  ;;  %v850_v29 = vpop.eup %849  ;;  %v323_v33 = vpop.xlane.xlu0 %322 }
 0x3ff   :  { %v852_v30 = vpop.eup %851  ;;  %v339_v31 = vmul.f32 %v850_v29, %v834_v1  ;;  %853 = vrcp.f32 %v323_v33 }
 0x400   :  { %v344_v27 = vpack.c.bf16 %v338_v25, %v337_v24  ;;  %v340_v32 = vmul.f32 %v852_v30, %v1151_v52  ;;  %855 = vrcp.f32 %v326_v35 }
 0x402   :  { %711 = vmatmul.msk.bf16.gmra.mxu2 %vm254_vm9, %v344_v27  ;;  %v345_v34 = vpack.c.bf16 %v340_v32, %v339_v31 }
 0x405   :  { %v854_v36 = vpop.eup %853 }
 0x406   :  { %v856_v37 = vpop.eup %855  ;;  %v341_v38 = vmul.f32 %v854_v36, %v840_v6 }
 0x407   :  { %v342_v39 = vmul.f32 %v856_v37, %v838_v5 }
 0x409   :  { %v346_v40 = vpack.c.bf16 %v342_v39, %v341_v38 }
 0x412   :  { %712 = vmatmul.msk.bf16.gmra.mxu2 %vm254_vm9, %v345_v34 }
 0x422   :  { %713 = vmatmul.msk.bf16.gmra.mxu2 %vm254_vm9, %v346_v40 }
 0x458   :  { %v380_v41 = vpop.f32.mrf.mxu2 }
 0x460   :  { %v382_v42 = vpop.f32.mrf.mxu2 }
 0x485   :  { %v385_v43 = vpop.f32.mrf.mxu2 }
 0x48d   :  { %v387_v44 = vpop.f32.mrf.mxu2 }
 0x48e   :  { %v799_v45 = vpack.i.bf16 %v387_v44, %v385_v43 }
 0x490   :  { %800 = vrot.lane.b32.xlu2 %v799_v45, %s981_s1  ;;  %v779_v45 = vld [vmem:[%s1243_s9 + $0x38] sm:$0xff] }
 0x491   :  { %659 = vmatpush.bf16.msrb.mxu3 %v779_v45 }
 0x495   :  { %v390_v46 = vpop.f32.mrf.mxu2 }
 0x49d   :  { %v392_v47 = vpop.f32.mrf.mxu2 }
 0x49e   :  { %v804_v49 = vpack.i.bf16 %v392_v47, %v390_v46  ;;  %v778_v46 = vld [vmem:[%s1243_s9 + $0x30] sm:$0xff]  ;;  %v777_v47 = vld [vmem:[%s1243_s9 + $0x28] sm:$0xff] }
 0x49f   :  { %660 = vmatpush.bf16.msrb.mxu3 %v778_v46 }
 0x4a0   :  { %805 = vrot.lane.b32.xlu0 %v804_v49, %s982_s25  ;;  %v776_v49 = vld [vmem:[%s1243_s9 + $0x20] sm:$0xff] }
 0x4a3   :  { %661 = vmatpush.bf16.msrb.mxu3 %v777_v47 }
 0x4a5   :  { %v395_v51 = vpop.f32.mrf.mxu2 }
 0x4a7   :  { %662 = vmatpush.bf16.msrb.mxu3 %v776_v49 }
 0x4ad   :  { %v397_v52 = vpop.f32.mrf.mxu2 }
 0x4ae   :  { %v809_v53 = vpack.i.bf16 %v397_v52, %v395_v51  ;;  %v775_v51 = vld [vmem:[%s1243_s9 + $0x18] sm:$0xff]  ;;  %v817_v52 = vld [vmem:[%s1242_s8] ss:$0 sm:$0xff] }
 0x4af   :  { %663 = vmatpush.bf16.msrb.mxu3 %v775_v51 }
 0x4b0   :  { %810 = vrot.lane.b32.xlu1 %v809_v53, %s983_s15  ;;  %v774_v53 = vld [vmem:[%s1243_s9 + $0x10] sm:$0xff] }
 0x4b3   :  { %664 = vmatpush.bf16.msrb.mxu3 %v774_v53 }
 0x4ea   :  { %v801_v56 = vpop.permute.xlu2 %800 }
 0x4eb   :  { %v803_v58 = vunpack.i.h.bf16 %v801_v56  ;;  %v802_v59 = vunpack.i.l.bf16 %v801_v56 }
 0x4ed   :  { %v425_v63 = vsel %vm200_vm8, %v382_v42, %v803_v58  ;;  %v424_v1 = vsel %vm200_vm8, %v380_v41, %v802_v59  ;;  %v772_v58 = vld [vmem:[%s1243_s9] sm:$0xff] }
 0x512   :  { %v806_v57 = vpop.permute.xlu0 %805 }
 0x513   :  { %v808_v60 = vunpack.i.h.bf16 %v806_v57  ;;  %v807_v61 = vunpack.i.l.bf16 %v806_v57  ;;  %v773_v57 = vld [vmem:[%s1243_s9 + $0x8] sm:$0xff] }
 0x514   :  { %665 = vmatpush.bf16.msrb.mxu3 %v773_v57 }
 0x515   :  { %v428_v50 = vsel %vm426_vm10, %v425_v63, %v808_v60  ;;  %v427_v48 = vsel %vm426_vm10, %v424_v1, %v807_v61 }
 0x518   :  { %666 = vmatpush.bf16.msrb.mxu3 %v772_v58 }
 0x522   :  { %v811_v62 = vpop.permute.xlu1 %810 }
 0x523   :  { %v813_v3 = vunpack.i.h.bf16 %v811_v62  ;;  %v812_v4 = vunpack.i.l.bf16 %v811_v62 }
 0x525   :  { %v430_v5 = vsel %vm429_vm11, %v427_v48, %v812_v4  ;;  %v431_v6 = vsel %vm429_vm11, %v428_v50, %v813_v3 }
 0x526   :  { %v432_v7 = vpack.c.bf16 %v431_v6, %v430_v5 }
 0x528   :  { %722 = vmatmul.msk.bf16.vlgmr.msra.gmra.mxu3 %vm91_vm0, %v432_v7 }
 0x5ab   :  { %v465_v9 = vpop.f32.mrf.mxu3 }
 0x5ac   :  { %v466_v10 = vadd.f32 %v815_v8, %v465_v9 }
 0x5ae   :  { %v1177_v11 = vadd.f32 %v466_v10, %v1064_v0 }
 0x5b0   :  { %v472_v12 = vmul.f32 %v1177_v11, %v1177_v11 }
 0x5b2   :  { %v474_v14 = vsel %vm91_vm0, %v472_v12, 0.0 }
 0x5b3   :  { %v467_v15 = vpop.f32.mrf.mxu3  ;;  %475 = vadd.xlane.f32.xlu0 %v474_v14 }
 0x5b4   :  { %v468_v16 = vadd.f32 %v815_v8, %v467_v15 }
 0x5b6   :  { %v1183_v17 = vadd.f32 %v468_v16, %v1071_v2 }
 0x5b8   :  { %v473_v18 = vmul.f32 %v1183_v17, %v1183_v17 }
 0x5ba   :  { %v477_v19 = vsel %vm91_vm0, %v473_v18, 0.0 }
 0x5bb   :  { %478 = vadd.xlane.f32.xlu2 %v477_v19 }
 0x626   :  { %v476_v0 = vpop.xlane.xlu0 %475 }
 0x627   :  { %v480_v21 = vmul.f32 %v476_v0, %v1077_v13 }
 0x629   :  { %v482_v23 = vadd.f32 1.1920929e-07, %v480_v21 }
 0x62b   :  { %857 = vrsqrt.f32 %v482_v23  ;;  %vm490_vm13 = vweird.f32 %v482_v23 }
 0x62e   :  { %v479_v24 = vpop.xlane.xlu2 %478 }
 0x62f   :  { %v481_v25 = vmul.f32 %v479_v24, %v1077_v13  ;;  %v816_v13 = vld [vmem:[%s1240_s6] ss:$0 sm:$0xff] }
 0x631   :  { %v858_v2 = vpop.eup %857  ;;  %v483_v26 = vadd.f32 1.1920929e-07, %v481_v25 }
 0x632   :  { %v485_v27 = vmul.f32 %v858_v2, %v482_v23  ;;  %vm491_vm12 = vweird.f32 %v858_v2 }
 0x633   :  { %859 = vrsqrt.f32 %v483_v26  ;;  %vm492_vm14 = vmor %vm490_vm13, %vm491_vm12  ;;  %vm500_vm1 = vweird.f32 %v483_v26 }
 0x634   :  { %v486_v28 = vmul.f32 %v858_v2, %v485_v27 }
 0x636   :  { %v487_v29 = vmul.f32 0.5, %v486_v28 }
 0x638   :  { %v488_v30 = vsub.f32 1.5, %v487_v29 }
 0x639   :  { %v860_v31 = vpop.eup %859 }
 0x63a   :  { %v495_v32 = vmul.f32 %v860_v31, %v483_v26  ;;  %v489_v33 = vmul.f32 %v858_v2, %v488_v30  ;;  %vm501_vm15 = vweird.f32 %v860_v31  ;;  %v818_v26 = vld [vmem:[%s1244_s10] ss:$0 sm:$0xff]  ;;  %s985_s10 = smov 128  }
 0x63b   :  { %vm502_vm2 = vmor %vm500_vm1, %vm501_vm15 }
 0x63c   :  { %v496_v34 = vmul.f32 %v860_v31, %v495_v32  ;;  %v493_v36 = vsel %vm492_vm14, %v858_v2, %v489_v33 }
 0x63d   :  { %v504_v39 = vmul.f32 %v493_v36, %v1177_v11 }
 0x63e   :  { %v497_v35 = vmul.f32 0.5, %v496_v34 }
 0x63f   :  { %v510_v42 = vmul.f32 %v816_v13, %v504_v39 }
 0x640   :  { %v498_v37 = vsub.f32 1.5, %v497_v35 }
 0x642   :  { %v499_v38 = vmul.f32 %v860_v31, %v498_v37 }
 0x644   :  { %v503_v40 = vsel %vm502_vm2, %v860_v31, %v499_v38 }
 0x645   :  { %v505_v41 = vmul.f32 %v503_v40, %v1183_v17 }
 0x647   :  { %v511_v43 = vmul.f32 %v816_v13, %v505_v41 }
 0x649   :  { %v512_v44 = vpack.c.bf16 %v511_v43, %v510_v42 }
 0x64b   :  { %731 = vmatmul.msk.bf16.vlgmr.msra.gmra.mxu0 %vm91_vm0, %v512_v44 }
 0x6c8   :  { %v545_v54 = vpop.f32.mrf.mxu0 }
 0x6c9   :  { %v546_v55 = vadd.f32 %v817_v52, %v545_v54 }
 0x6cb   :  { %v732_v56 = vmul.f32 -1.442695, %v546_v55 }
 0x6cd   :  { %861 = vpow2.f32 %v732_v56 }
 0x6d0   :  { %v547_v59 = vpop.f32.mrf.mxu0 }
 0x6d1   :  { %v548_v60 = vadd.f32 %v817_v52, %v547_v59 }
 0x6d3   :  { %v862_v61 = vpop.eup %861  ;;  %v733_v62 = vmul.f32 -1.442695, %v548_v60 }
 0x6d4   :  { %v556_v63 = vadd.f32 1.0, %v862_v61 }
 0x6d5   :  { %863 = vpow2.f32 %v733_v62 }
 0x6d6   :  { %865 = vrcp.f32 %v556_v63  ;;  %v569_v9 = vand.u32 2147483648, %v556_v63  ;;  %vm563_vm4 = vweird.f32 %v556_v63  ;;  %v567_v10 = vand.u32 2147483647, %v556_v63 }
 0x6d8   :  { %v570_v19 = vor.u32 1.1754944e-38, %v569_v9  ;;  %vm568_vm7 = vcmp.eq.f32.partialorder %v567_v10, 8.507059e+37 }
 0x6db   :  { %v864_v1 = vpop.eup %863 }
 0x6dc   :  { %v866_v3 = vpop.eup %865  ;;  %v557_v4 = vadd.f32 1.0, %v864_v1 }
 0x6dd   :  { %v559_v50 = vmul.f32 %v866_v3, %v556_v63  ;;  %vm564_vm3 = vweird.f32 %v866_v3 }
 0x6de   :  { %867 = vrcp.f32 %v557_v4  ;;  %vm565_vm5 = vmor %vm563_vm4, %vm564_vm3  ;;  %v584_v14 = vand.u32 2147483648, %v557_v4  ;;  %v582_v18 = vand.u32 2147483647, %v557_v4  ;;  %vm578_vm8 = vweird.f32 %v557_v4 }
 0x6df   :  { %v560_v48 = vsub.f32 1.0, %v559_v50 }
 0x6e0   :  { %v585_v21 = vor.u32 1.1754944e-38, %v584_v14  ;;  %vm583_vm10 = vcmp.eq.f32.partialorder %v582_v18, 8.507059e+37 }
 0x6e1   :  { %v561_v5 = vmul.f32 %v866_v3, %v560_v48 }
 0x6e3   :  { %v562_v7 = vadd.f32 %v866_v3, %v561_v5 }
 0x6e4   :  { %v868_v6 = vpop.eup %867 }
 0x6e5   :  { %v574_v8 = vmul.f32 %v868_v6, %v557_v4  ;;  %v566_v15 = vsel %vm565_vm5, %v866_v3, %v562_v7  ;;  %vm579_vm6 = vweird.f32 %v868_v6 }
 0x6e6   :  { %v571_v0 = vsel %vm568_vm7, %v570_v19, %v566_v15  ;;  %vm580_vm9 = vmor %vm578_vm8, %vm579_vm6 }
 0x6e7   :  { %v575_v12 = vsub.f32 1.0, %v574_v8  ;;  %v588_v24 = vmul.f32 %v571_v0, %v546_v55 }
 0x6e9   :  { %v576_v16 = vmul.f32 %v868_v6, %v575_v12 }
 0x6eb   :  { %v577_v20 = vadd.f32 %v868_v6, %v576_v16 }
 0x6ed   :  { %v581_v22 = vsel %vm580_vm9, %v868_v6, %v577_v20 }
 0x6ee   :  { %v586_v23 = vsel %vm583_vm10, %v585_v21, %v581_v22 }
 0x6ef   :  { %v589_v25 = vmul.f32 %v586_v23, %v548_v60 }
 0x6f1   :  { %v590_v2 = vpack.c.bf16 %v589_v25, %v588_v24 }
 0x6f3   :  { %667 = vmatmul.bf16.vlgmr.msrb.gmra.mxu3 %v590_v2 }
 0x776   :  { %v668_v27 = vpop.f32.mrf.mxu3 }
 0x777   :  { %v669_v28 = vadd.f32 %v818_v26, %v668_v27 }
 0x779   :  { %v673_v29 = vadd.f32 %v669_v28, %v1177_v11 }
 0x77b   :  { %675 = vst.msk [vmem:[#allocation8] sm:$0xff] %vm91_vm0, %v673_v29 }
 0x77e   :  { %v670_v30 = vpop.f32.mrf.mxu3 }
 0x77f   :  { %v671_v31 = vadd.f32 %v818_v26, %v670_v30 }
 0x781   :  { %v674_v32 = vadd.f32 %v671_v31, %v1183_v17 }
 0x783   :  { %676 = vst.msk [vmem:[#allocation8 + $0x8] sm:$0xff] %vm91_vm0, %v674_v32 }
 0x784   :  { %689 = dma.vmem_to_hbm [thread:$0]  %s682_s7, 256, %s684_s0, [#allocation4], %s985_s10, %s985_s10, %s981_s1  }
 0x785   :  { %969 = dma.done.wait [#allocation4], 256  }
 0x786   :  { %970 = vsyncadd [#allocation4], 4294967040 }
 0x787   :  { %694 = vsyncpa [#allocation3], 1 }
 0x788   :  { %695 = vsyncpa [#allocation6], 1 }
 0x789   :  { %696 = vsyncpa [#allocation4], 1 }

</bundles_post_ra>
